<compile_context>
chip_gen: v7x
topology: tpu7x:2x2x1
jax: 0.10.0
libtpu: 0.0.40
codegen_flags: <defaults>
</compile_context>

<pallas_src>
import jax
import jax.numpy as jnp
from jax.experimental import pallas as pl
from jax.experimental.pallas import tpu as pltpu


_LANE = 1024                  # lane-dense last dim (multiple of 128)
_MAX_ROW_TILE = 512           # (512, 1024) f32 tile = 2 MiB; in+out double-buffered = 8 MiB
_PALLAS_MIN_BYTES = 1 << 20   # below this, pure-JAX (XLA fusion) beats launch overhead


def _neg_hardsigmoid_kernel(x_ref, o_ref):
    # relu6(3x + 3)/6 - 0.5  ==  clamp(0.5*x, -0.5, 0.5)
    # Compute in f32 (exact for f32 inputs; safe upcast for bf16 on v5e which
    # lacks bf16 VALUs). Cast back to the output dtype at store time.
    xf = x_ref[...].astype(jnp.float32)
    y = jnp.clip(xf * 0.5, -0.5, 0.5)
    o_ref[...] = y.astype(o_ref.dtype)


def _neg_hardsigmoid_ref(x: jax.Array) -> jax.Array:
    """Pure-JAX reference matching F.relu6(3*x + 3)/6 - 0.5."""
    return (jnp.clip(3.0 * x + 3.0, 0.0, 6.0) / 6.0 - 0.5).astype(x.dtype)


def neg_hardsigmoid(x: jax.Array, *, force_pallas: bool = False) -> jax.Array:
    """Applies NegHardsigmoid elementwise. Accepts any shape (NCHW expected)."""
    orig_shape = x.shape
    orig_dtype = x.dtype
    total = x.size
    if total == 0:
        return x

    # Small tensors: kernel-launch / per-grid-step overhead dwarfs the work.
    if not force_pallas and total * x.dtype.itemsize < _PALLAS_MIN_BYTES:
        return _neg_hardsigmoid_ref(x)

    # ---- Lane-dense 2-D slab: (rows, 1024), last dim a multiple of 128. ----
    flat = x.reshape(-1)
    rows = pl.cdiv(total, _LANE)
    if rows <= _MAX_ROW_TILE:
        # Single row-tile equal to the full first dim — exempt from the
        # (8, 128) divisibility rule (block dim == full array dim).
        row_tile = rows
        rows_padded = rows
    else:
        row_tile = _MAX_ROW_TILE
        rows_padded = pl.cdiv(rows, row_tile) * row_tile

    padded_total = rows_padded * _LANE
    if padded_total != total:
        flat = jnp.pad(flat, (0, padded_total - total))
    x2d = flat.reshape(rows_padded, _LANE)

    grid = (rows_padded // row_tile,)
    out2d = pl.pallas_call(
        _neg_hardsigmoid_kernel,
        out_shape=jax.ShapeDtypeStruct((rows_padded, _LANE), orig_dtype),
        grid=grid,
        in_specs=[pl.BlockSpec((row_tile, _LANE), lambda i: (i, 0))],
        out_specs=pl.BlockSpec((row_tile, _LANE), lambda i: (i, 0)),
        compiler_params=pltpu.CompilerParams(
            dimension_semantics=("parallel",),
        ),
    )(x2d)

    out_flat = out2d.reshape(-1)
    if padded_total != total:
        out_flat = out_flat[:total]
    return out_flat.reshape(orig_shape)


if __name__ == "__main__":
    key = jax.random.PRNGKey(0)
    k1, k2 = jax.random.split(key)

    # Primary test: NCHW activation at the module's nominal small shape.
    # Forced through the Pallas path so the kernel itself is exercised.
    x = jax.random.normal(k1, (2, 4, 16, 16), dtype=jnp.float32) * 2.0
    y = neg_hardsigmoid(x, force_pallas=True)
    jax.block_until_ready(y)
    y_ref = _neg_hardsigmoid_ref(x)
    assert y.shape == x.shape and y.dtype == x.dtype
    assert jnp.allclose(y, y_ref, atol=2e-6, rtol=2e-6), "mismatch vs reference (small)"

    # Secondary test: larger tensor with a multi-tile grid; also exercises the
    # ragged-tail padding path via an odd spatial size.
    x_big = jax.random.normal(k2, (2, 16, 150, 192), dtype=jnp.float32) * 3.0
    y_big = neg_hardsigmoid(x_big, force_pallas=True)
    jax.block_until_ready(y_big)
    assert jnp.allclose(y_big, _neg_hardsigmoid_ref(x_big), atol=2e-6, rtol=2e-6), \
        "mismatch vs reference (tiled/padded)"

    # Default dispatch for tiny tensors takes the pure-JAX fast path; must still match.
    y_small = neg_hardsigmoid(x)
    jax.block_until_ready(y_small)
    assert jnp.allclose(y_small, y_ref, atol=2e-6, rtol=2e-6), "mismatch on fallback path"

    print("KERNEL_OK")
</pallas_src>

<mosaic_0001>
module attributes {stable_mosaic.version = 11 : i64} {
  func.func @_neg_hardsigmoid_kernel(%arg0: i32, %arg1: memref<2x1024xf32, #tpu.memory_space<vmem>>, %arg2: memref<2x1024xf32, #tpu.memory_space<vmem>>) attributes {dimension_semantics = [#tpu.dimension_semantics<parallel>], iteration_bounds = array<i64: 1>, scalar_prefetch = 0 : i64, scratch_operands = 0 : i64, tpu.core_type = #tpu.core_type<tc>, window_params = [{transform_indices = @transform_0, window_bounds = array<i64: 2, 1024>}, {transform_indices = @transform_1, window_bounds = array<i64: 2, 1024>}]} {
    %c0 = arith.constant 0 : index
    %c0_0 = arith.constant 0 : index
    %0 = vector.load %arg1[%c0, %c0_0] : memref<2x1024xf32, #tpu.memory_space<vmem>>, vector<2x1024xf32>
    %cst = arith.constant 5.000000e-01 : f32
    %1 = vector.broadcast %cst : f32 to vector<2x1024xf32>
    %2 = arith.mulf %0, %1 : vector<2x1024xf32>
    %cst_1 = arith.constant -5.000000e-01 : f32
    %cst_2 = arith.constant 5.000000e-01 : f32
    %3 = vector.broadcast %cst_1 : f32 to vector<2x1024xf32>
    %4 = arith.maximumf %3, %2 : vector<2x1024xf32>
    %5 = vector.broadcast %cst_2 : f32 to vector<2x1024xf32>
    %6 = arith.minimumf %5, %4 : vector<2x1024xf32>
    %c0_3 = arith.constant 0 : index
    %c0_4 = arith.constant 0 : index
    %7 = vector.load %arg2[%c0_3, %c0_4] : memref<2x1024xf32, #tpu.memory_space<vmem>>, vector<2x1024xf32>
    tpu.vector_store %arg2[%c0_3, %c0_4], %6 {strides = array<i32>} : memref<2x1024xf32, #tpu.memory_space<vmem>>, vector<2x1024xf32>,
    return
  }
  func.func @transform_0(%arg0: i32) -> (i32, i32) {
    %c0_i32 = arith.constant 0 : i32
    %c0_i32_0 = arith.constant 0 : i32
    return %arg0, %c0_i32 : i32, i32
  }
  func.func @transform_1(%arg0: i32) -> (i32, i32) {
    %c0_i32 = arith.constant 0 : i32
    %c0_i32_0 = arith.constant 0 : i32
    return %arg0, %c0_i32 : i32, i32
  }
}

</mosaic_0001>

<bundles_post_ra>
// kernel: tpu_custom_call.1
= control target key start
LH: loop header
LB: loop body
LE: loop exit
PB: predicated region body
PF: predicated region fallthrough
CT: control target
= control target key end

     0   :  { %6 = vsyncpa [#allocation3], 0  ;;  %s134_s0 = inlined_call_operand.hbm [shape: f32[2,1024], index: 0, kind: input, shape index: {}]   ;;  %s135_s1 = inlined_call_operand.hbm [shape: f32[2,1024], index: 1, kind: output, shape index: {}]  }
   0x1   :  { %7 = vsyncpa [#allocation4], 0  ;;  %s98_s6 = smov [#allocation2]   ;;  %s50_s10 = scalar_lea.hbm %s134_s0, 256 }
   0x2   :  { %s14_s7 = sshll.u32 %s98_s6, 4  ;;  %p51_p0 = scmp.ne.s32.totalorder %s134_s0, %s50_s10  ;;  %s15_s7 = int_to_ptr.vmem [resolvable:$true] %s14_s7 }
   0x3   :  { %p54_p1 = scmp.lt.u32.totalorder %s50_s10, %s134_s0 }
   0x5   :  { %p56_p2 = pnand %p54_p1, %p51_p0 }
   0x7   :  { %59 = shalt.err (!%p56_p2)
}
   0x8   :  { %s60_s15 = scalar_lea.vmem %s15_s7, 256  ;;  %p65_p4 = scmp.lt.s32.totalorder %s15_s7, %s15_s7 }
   0x9   :  { %p61_p3 = scmp.ne.s32.totalorder %s15_s7, %s60_s15  ;;  %p66_p5 = scmp.lt.s32.totalorder %s60_s15, %s60_s15 }
   0xb   :  { %p67_p6 = por %p66_p5, %p65_p4 }
   0xd   :  { %p68_p7 = pnand %p67_p6, %p61_p3 }
   0xf   :  { %71 = shalt.err (!%p68_p7)
}
  0x10   :  { %17 = dma.hbm_to_vmem [thread:$0]  %s134_s0, 256, %s15_s7, [#allocation3]  }
  0x11   :  { %94 = dma.done.wait [#allocation3], 256  }
  0x12   :  { %95 = vsyncadd [#allocation3], 4294967040  ;;  %v21_v0 = vld [vmem:[#allocation2] sm:$0xff]  ;;  %v22_v1 = vld [vmem:[#allocation2 + $0x8] sm:$0xff]  ;;  %s99_s18 = smov [#allocation5]  }
  0x13   :  { %s37_s19 = sshll.u32 %s99_s18, 4  ;;  %v23_v2 = vmul.f32 0.5, %v21_v0  ;;  %v24_v3 = vmul.f32 0.5, %v22_v1  ;;  %s38_s19 = int_to_ptr.vmem [resolvable:$true] %s37_s19 }
  0x14   :  { %s72_s20 = scalar_lea.vmem %s38_s19, 256  ;;  %p77_p9 = scmp.lt.s32.totalorder %s38_s19, %s38_s19 }
  0x15   :  { %v46_v4 = vclamps-f32 %v23_v2, 0.5  ;;  %v47_v5 = vclamps-f32 %v24_v3, 0.5  ;;  %p73_p8 = scmp.ne.s32.totalorder %s38_s19, %s72_s20  ;;  %p78_p10 = scmp.lt.s32.totalorder %s72_s20, %s72_s20 }
  0x17   :  { %29 = vst [vmem:[#allocation5] sm:$0xff] %v46_v4  ;;  %30 = vst [vmem:[#allocation5 + $0x8] sm:$0xff] %v47_v5  ;;  %p79_p11 = por %p78_p10, %p77_p9 }
  0x19   :  { %p80_p12 = pnand %p79_p11, %p73_p8 }
  0x1b   :  { %83 = shalt.err (!%p80_p12)
}
  0x1c   :  { %s84_s22 = scalar_lea.hbm %s135_s1, 256 }
  0x1d   :  { %p85_p13 = scmp.ne.s32.totalorder %s135_s1, %s84_s22  ;;  %p88_p0 = scmp.lt.u32.totalorder %s84_s22, %s135_s1 }
  0x1f   :  { %p90_p1 = pnand %p88_p0, %p85_p13 }
  0x21   :  { %93 = shalt.err (!%p90_p1)
}
  0x22   :  { %40 = dma.vmem_to_hbm [thread:$0]  %s38_s19, 256, %s135_s1, [#allocation4]  }
  0x23   :  { %96 = dma.done.wait [#allocation4], 256  }
  0x24   :  { %97 = vsyncadd [#allocation4], 4294967040 }
  0x25   :  { %44 = vsyncpa [#allocation3], 1 }
  0x26   :  { %45 = vsyncpa [#allocation4], 1 }

</bundles_post_ra>
